<compile_context>
chip_gen: v6e
topology: v6e:2x2x1
jax: 0.10.0
libtpu: 0.0.40
codegen_flags: <defaults>
</compile_context>

<pallas_src>
import jax
import jax.numpy as jnp
from jax.experimental import pallas as pl
from jax.experimental.pallas import tpu as pltpu


def _tv_kernel(x_ref, o_ref):
    """x_ref: (G, H, W) block of whole channel-images.  o_ref: (1, 2, 8, 128)."""
    x = x_ref[...]                                    # input dtype (f32 / bf16)
    # Intra-image finite differences: no masks needed because block boundaries
    # coincide with channel-image boundaries.
    dh = (x[:, 1:, :] - x[:, :-1, :]).astype(jnp.float32)
    dw = (x[:, :, 1:] - x[:, :, :-1]).astype(jnp.float32)
    h_sum = jnp.sum(dh * dh)
    w_sum = jnp.sum(dw * dw)
    # Lane-dense, unmasked (8, 128) stores; final cross-block reduce is done in
    # the wrapper (per-block scalar reduce is amortized over a multi-MiB block).
    o_ref[0, 0, :, :] = jnp.full((8, 128), h_sum, dtype=jnp.float32)
    o_ref[0, 1, :, :] = jnp.full((8, 128), w_sum, dtype=jnp.float32)


def _chip_budgets():
    """(vmem_capacity, target_input_block_bytes, base_vmem_limit_bytes)."""
    try:
        cap = pltpu.get_tpu_info().vmem_capacity_bytes
    except Exception:
        cap = 64 * 1024 * 1024                         # assume v7x-sized VMEM
    if cap >= 128 * 1024 * 1024:                       # v5e / v6e
        return cap, 6 * 1024 * 1024, 80 * 1024 * 1024
    return cap, 4 * 1024 * 1024, 40 * 1024 * 1024      # v7x (64 MiB / TC)


def _select_block_images(num_images, h, w, itemsize, target_block_bytes):
    """Largest G | (B*C) with G whole images <= target, but keep >= ~8 steps."""
    per_image = h * w * itemsize
    total = num_images * per_image
    desired = min(target_block_bytes, max(total // 8, per_image))
    best = 1
    for g in range(1, num_images + 1):
        if num_images % g == 0 and g * per_image <= desired:
            best = g
    return best


def l_tv_loss(x, tv_loss_weight: float = 1.0):
    """Pallas TPU forward pass of Zero-DCE L_TV.  x: (B, C, H, W)."""
    B, C, H, W = x.shape
    count_h = (H - 1) * W
    count_w = H * (W - 1)
    num_images = B * C

    vmem_cap, target_block_bytes, base_vmem_limit = _chip_budgets()
    itemsize = jnp.dtype(x.dtype).itemsize
    g = _select_block_images(num_images, H, W, itemsize, target_block_bytes)
    num_blocks = num_images // g

    # Double-buffered input + fused f32 temporaries + headroom.
    block_in_bytes = g * H * W * itemsize
    block_f32_bytes = g * H * W * 4
    needed = 2 * block_in_bytes + 4 * block_f32_bytes + (2 << 20)
    vmem_limit = int(min(max(base_vmem_limit, needed), vmem_cap * 9 // 10))

    x3 = x.reshape(num_images, H, W)                  # free view of NCHW

    cost = pl.CostEstimate(
        flops=4 * x.size,
        transcendentals=0,
        bytes_accessed=int(x.size * itemsize + num_blocks * 2 * 8 * 128 * 4),
    )

    part = pl.pallas_call(
        _tv_kernel,
        out_shape=jax.ShapeDtypeStruct((num_blocks, 2, 8, 128), jnp.float32),
        grid=(num_blocks,),
        in_specs=[pl.BlockSpec((g, H, W), lambda i: (i, 0, 0))],
        out_specs=pl.BlockSpec((1, 2, 8, 128), lambda i: (i, 0, 0, 0)),
        compiler_params=pltpu.CompilerParams(
            dimension_semantics=("parallel",),
            vmem_limit_bytes=vmem_limit,
        ),
        cost_estimate=cost,
    )(x3)

    h_tv = jnp.sum(part[:, 0, 0, 0])
    w_tv = jnp.sum(part[:, 1, 0, 0])
    return tv_loss_weight * 2.0 * (h_tv / count_h + w_tv / count_w) / B


def _l_tv_ref(x, tv_loss_weight: float = 1.0):
    """Pure-JAX reference mirroring the PyTorch forward."""
    B, C, H, W = x.shape
    count_h = (H - 1) * W
    count_w = H * (W - 1)
    h_tv = jnp.sum(jnp.square(x[:, :, 1:, :] - x[:, :, :-1, :]))
    w_tv = jnp.sum(jnp.square(x[:, :, :, 1:] - x[:, :, :, :-1]))
    return tv_loss_weight * 2.0 * (h_tv / count_h + w_tv / count_w) / B


if __name__ == "__main__":
    key = jax.random.PRNGKey(0)
    B, C, H, W = 2, 4, 16, 16
    x = jax.random.uniform(key, (B, C, H, W), dtype=jnp.float32)

    out = jax.block_until_ready(l_tv_loss(x))
    ref = jax.block_until_ready(_l_tv_ref(x))

    assert jnp.allclose(out, ref, rtol=1e-5, atol=1e-6), (out, ref)
    print("KERNEL_OK")
</pallas_src>

<mosaic_0001>
module attributes {stable_mosaic.version = 11 : i64} {
  func.func @_tv_kernel(%arg0: i32, %arg1: memref<1x16x16xf32, #tpu.memory_space<vmem>>, %arg2: memref<1x2x8x128xf32, #tpu.memory_space<vmem>>) attributes {dimension_semantics = [#tpu.dimension_semantics<parallel>], iteration_bounds = array<i64: 8>, scalar_prefetch = 0 : i64, scratch_operands = 0 : i64, tpu.core_type = #tpu.core_type<tc>, window_params = [{transform_indices = @transform_0, window_bounds = array<i64: 1, 16, 16>}, {transform_indices = @transform_1, window_bounds = array<i64: 1, 2, 8, 128>}]} {
    %c0 = arith.constant 0 : index
    %c0_0 = arith.constant 0 : index
    %c0_1 = arith.constant 0 : index
    %0 = vector.load %arg1[%c0, %c0_0, %c0_1] : memref<1x16x16xf32, #tpu.memory_space<vmem>>, vector<1x16x16xf32>
    %1 = vector.extract_strided_slice %0 {offsets = [0, 1, 0], sizes = [1, 15, 16], strides = [1, 1, 1]} : vector<1x16x16xf32> to vector<1x15x16xf32>
    %2 = vector.extract_strided_slice %0 {offsets = [0, 0, 0], sizes = [1, 15, 16], strides = [1, 1, 1]} : vector<1x16x16xf32> to vector<1x15x16xf32>
    %3 = arith.subf %1, %2 : vector<1x15x16xf32>
    %4 = vector.extract_strided_slice %0 {offsets = [0, 0, 1], sizes = [1, 16, 15], strides = [1, 1, 1]} : vector<1x16x16xf32> to vector<1x16x15xf32>
    %5 = vector.extract_strided_slice %0 {offsets = [0, 0, 0], sizes = [1, 16, 15], strides = [1, 1, 1]} : vector<1x16x16xf32> to vector<1x16x15xf32>
    %6 = arith.subf %4, %5 : vector<1x16x15xf32>
    %7 = arith.mulf %3, %3 : vector<1x15x16xf32>
    %8 = vector.shape_cast %7 : vector<1x15x16xf32> to vector<1x1x15x16xf32>
    %cst = arith.constant dense<0.000000e+00> : vector<1xf32>
    %9 = vector.multi_reduction <add>, %8, %cst [1, 2, 3] : vector<1x1x15x16xf32> to vector<1xf32>
    %10 = vector.shape_cast %9 : vector<1xf32> to vector<1x1x1x1xf32>
    %11 = vector.extract %10[0, 0, 0, 0] : f32 from vector<1x1x1x1xf32>
    %12 = arith.mulf %6, %6 : vector<1x16x15xf32>
    %13 = vector.shape_cast %12 : vector<1x16x15xf32> to vector<1x1x16x15xf32>
    %cst_2 = arith.constant dense<0.000000e+00> : vector<1xf32>
    %14 = vector.multi_reduction <add>, %13, %cst_2 [1, 2, 3] : vector<1x1x16x15xf32> to vector<1xf32>
    %15 = vector.shape_cast %14 : vector<1xf32> to vector<1x1x1x1xf32>
    %16 = vector.extract %15[0, 0, 0, 0] : f32 from vector<1x1x1x1xf32>
    %17 = vector.broadcast %11 : f32 to vector<8x128xf32>
    %c0_3 = arith.constant 0 : index
    %c0_4 = arith.constant 0 : index
    %c0_5 = arith.constant 0 : index
    %c0_6 = arith.constant 0 : index
    %18 = vector.load %arg2[%c0_3, %c0_4, %c0_5, %c0_6] : memref<1x2x8x128xf32, #tpu.memory_space<vmem>>, vector<1x1x8x128xf32>
    %19 = vector.shape_cast %18 : vector<1x1x8x128xf32> to vector<8x128xf32>
    %20 = vector.shape_cast %17 : vector<8x128xf32> to vector<1x1x8x128xf32>
    tpu.vector_store %arg2[%c0_3, %c0_4, %c0_5, %c0_6], %20 {strides = array<i32>} : memref<1x2x8x128xf32, #tpu.memory_space<vmem>>, vector<1x1x8x128xf32>,
    %21 = vector.broadcast %16 : f32 to vector<8x128xf32>
    %c0_7 = arith.constant 0 : index
    %c1 = arith.constant 1 : index
    %c0_8 = arith.constant 0 : index
    %c0_9 = arith.constant 0 : index
    %22 = vector.load %arg2[%c0_7, %c1, %c0_8, %c0_9] : memref<1x2x8x128xf32, #tpu.memory_space<vmem>>, vector<1x1x8x128xf32>
    %23 = vector.shape_cast %22 : vector<1x1x8x128xf32> to vector<8x128xf32>
    %24 = vector.shape_cast %21 : vector<8x128xf32> to vector<1x1x8x128xf32>
    tpu.vector_store %arg2[%c0_7, %c1, %c0_8, %c0_9], %24 {strides = array<i32>} : memref<1x2x8x128xf32, #tpu.memory_space<vmem>>, vector<1x1x8x128xf32>,
    return
  }
  func.func @transform_0(%arg0: i32) -> (i32, i32, i32) {
    %c0_i32 = arith.constant 0 : i32
    %c0_i32_0 = arith.constant 0 : i32
    %c0_i32_1 = arith.constant 0 : i32
    return %arg0, %c0_i32, %c0_i32_0 : i32, i32, i32
  }
  func.func @transform_1(%arg0: i32) -> (i32, i32, i32, i32) {
    %c0_i32 = arith.constant 0 : i32
    %c0_i32_0 = arith.constant 0 : i32
    %c0_i32_1 = arith.constant 0 : i32
    %c0_i32_2 = arith.constant 0 : i32
    return %arg0, %c0_i32, %c0_i32_0, %c0_i32_1 : i32, i32, i32, i32
  }
}

</mosaic_0001>

<bundles_post_ra>
// kernel: tpu_custom_call.1
= control target key start
LH: loop header
LB: loop body
LE: loop exit
PB: predicated region body
PF: predicated region fallthrough
CT: control target
= control target key end

     0   :  { %6 = vsyncpa [#allocation3], 0  ;;  %s635_s0 = inlined_call_operand.hbm [shape: f32[8,16,16], index: 0, kind: input, shape index: {}]   ;;  %s636_s1 = inlined_call_operand.hbm [shape: f32[8,2,8,128], index: 1, kind: output, shape index: {}]  }
   0x1   :  { %8 = vsyncpa [#allocation3 + $0x1], 0 }
   0x2   :  { %9 = vsyncpa [#allocation4], 0 }
   0x3   :  { %11 = vsyncpa [#allocation4 + $0x1], 0  ;;  %s479_s6 = smov 0   ;;  %s481_s7 = smov 0  }
   0x4   :  { %s483_s8 = smov 0   ;;  %s485_s9 = smov 0  }
   0x5 LB: > { %s500_s10 = sadd.s32 4294967295, %s459_s9   ;;  %s294_s11 = sadd.s32 4294967294, %s459_s9   ;;  %s459_s9 = sphi %s485_s9, %s650_s9   ;;  %s455_s8 = sphi %s483_s8, %s649_s8   ;;  %s451_s7 = sphi %s481_s7, %s648_s7   ;;  %s447_s6 = sphi %s479_s6, %s647_s6  }
   0x6   : > { %s504_s12 = sadd.s32 1, %s459_s9   ;;  %s24_s13 = sadd.s32 1, %s455_s8 }
   0x7   : > { %s21_s14 = ssub.s32 %s459_s9, %s504_s12  ;;  %p31_p0 = scmp.ne.s32.totalorder %s455_s8, %s451_s7 }
   0x8   : > { %p22_p1 = scmp.eq.s32.totalorder %s21_s14, 0  ;;  %p32_p2 = scmp.eq.s32.totalorder %s459_s9, 0 }
   0x9   : > { %p37_p3 = scmp.ne.s32.totalorder %s451_s7, %s447_s6  ;;  %p38_p4 = scmp.eq.s32.totalorder %s500_s10, 0 }
   0xa   : > { %s516_s15 = scalar_select %p22_p1, %s455_s8, %s24_s13  }
   0xb   : > { %p518_p5 = por %p32_p2, %p31_p0  ;;  %p522_p6 = por %p38_p4, %p37_p3 }
   0xc   : > { %p61_p7 = scmp.eq.s32.totalorder %s500_s10, 7  ;;  %p67_p8 = scmp.eq.s32.totalorder %s294_s11, 7 }
   0xd   : > { %s640_s17 = scalar_select %p522_p6, 1, 0 }
   0xe   : > { %p327_p9 = scmp.lt.s32.totalorder %s459_s9, 8  ;;  %p528_p10 = por %p61_p7, %p31_p0 }
   0xf   : > { %p532_p11 = por %p67_p8, %p37_p3  ;;  %s87_s20 = sand.u32 1, %s455_s8  }
  0x10   : > { %s641_s18 = scalar_select %p528_p10, 1, 0 }
  0x11   : > { %s642_s19 = scalar_select %p532_p11, 1, 0 }
  0x12   : > { %s309_s21 = sshll.u32 %s459_s9, 8  ;;  %s297_s22 = sshll.u32 %s87_s20, 4 }
  0x13   : > { %s541_s25 = scalar_lea.hbm %s635_s0, %s309_s21  ;;  %s91_s26 = scalar_lea.vmem [#allocation2], %s297_s22 }
  0x14   : > { %s98_s27 = sshll.u32 %s91_s26, 4  ;;  %p545_p12 = pnand %p327_p9, %p518_p5  ;;  %s549_s27 = int_to_ptr.vmem [resolvable:$true] %s98_s27 }
  0x15   : > { %s551_s29 = scalar_lea.sflag [#allocation3], %s87_s20  ;;  %s367_s30 = scalar_lea.hbm %s541_s25, 256 }
  0x16   : > { %p368_p13 = scmp.ne.s32.totalorder %s541_s25, %s367_s30  ;;  %p369_p0 = pneg %p545_p12 }
  0x17   : > { %s372_s4 = scalar_lea.hbm %s635_s0, 2048  ;;  %p373_p3 = scmp.lt.s32.totalorder %s541_s25, %s635_s0 }
  0x18   : > { %p370_p1 = pnand %p369_p0, %p368_p13  ;;  %p374_p4 = scmp.lt.s32.totalorder %s372_s4, %s367_s30 }
  0x1a   : > { %p371_p2 = pneg %p370_p1  ;;  %p375_p5 = por %p374_p4, %p373_p3 }
  0x1c   : > { %p376_p7 = pnand %p375_p5, %p371_p2 }
  0x1e   : > { %379 = shalt.err (!%p376_p7)
}
  0x1f   : > { %s380_s13 = scalar_lea.vmem %s549_s27, 256  ;;  %s461_s14 = smov [#allocation2]  }
  0x20   : > { %p381_p8 = scmp.ne.s32.totalorder %s549_s27, %s380_s13  ;;  %s385_s16 = sshll.u32 %s461_s14, 4  ;;  %s386_s16 = int_to_ptr.vmem [resolvable:$false] %s385_s16 }
  0x21   : > { %s387_s20 = scalar_lea.vmem %s386_s16, 512  ;;  %p388_p1 = scmp.lt.s32.totalorder %s549_s27, %s386_s16 }
  0x22   : > { %p383_p9 = pnand %p381_p8, %p369_p0  ;;  %p389_p11 = scmp.lt.s32.totalorder %s387_s20, %s380_s13 }
  0x24   : > { %p384_p13 = pneg %p383_p9  ;;  %p390_p10 = por %p389_p11, %p388_p1 }
  0x26   : > { %p391_p6 = pnand %p390_p10, %p384_p13 }
  0x28   : > { %394 = shalt.err (!%p391_p6)
}
  0x29   : > { %s462_s21 = smov 128   ;;  %s463_s22 = smov 8  }
  0x2a   : > { %322 = dma.hbm_to_vmem [thread:$0]  (!%p545_p12), %s541_s25, 256, %s549_s27, %s551_s29, %s462_s21, %s462_s21, %s463_s22  }
  0x2b   : > { %p300_p0 = scmp.ge.s32.totalorder %s459_s9, 1  ;;  %p106_p2 = scmp.lt.s32.totalorder %s459_s9, 9 }
  0x2d   : > { %p107_p3 = pnand %p300_p0, %p106_p2 }
  0x2e   : > { %s575_s23 = sand.u32 (!%p107_p3), 1, %s451_s7   ;;  %p644_p6 = scmp.ne.s32.totalorder (!%p107_p3), %s640_s17, 0 }
  0x2f   : > { %110 = sbr.rel (%p107_p3) target bundleno = 510 (0x1fe), region = 24  ;;  %s301_s24 = sshll.u32 (!%p107_p3), %s575_s23, 4 }
  0x30   : > { %s113_s26 = scalar_lea.sflag (!%p107_p3), [#allocation3], %s575_s23  ;;  %s116_s30 = scalar_lea.vmem (!%p107_p3), [#allocation2], %s301_s24 }
  0x34   : > { %438 = dma.done.wait (%p644_p6), %s113_s26, 256  }
  0x35   : > { %440 = vsyncadd (%p644_p6), %s113_s26, 4294967040  ;;  %v135_v0 = vld [vmem:[%s116_s30] sm:$0xff]  ;;  %s464_s25 = smov 1   ;;  %v136_v1 = vld [vmem:[%s116_s30 + $0x8] sm:$0xff]  ;;  %vm139_vm0 = vcmask 1040384   ;;  %vm159_vm1 = vcmask 1046528  }
  0x36   : > { %147 = vrot.lane.b32.xlu0 %v135_v0, %s464_s25  ;;  %v140_v2 = vrot.slane %v135_v0, 7  ;;  %v141_v3 = vrot.slane %v136_v1, 7  ;;  %vm165_vm2 = vcmask 130048   ;;  %vm167_vm3 = vcmask 129024   ;;  %s465_s17 = smov 127   ;;  %s134_s28 = scalar_lea.vmem [#allocation5], %s301_s24 }
  0x37   : > { %vm189_vm4 = vcmask 121856   ;;  %s221_s29 = sshll.u32 %s134_s28, 4  ;;  %s310_s2 = sshll.u32 %s500_s10, 8  ;;  %s588_s29 = int_to_ptr.vmem [resolvable:$true] %s221_s29 }
  0x38   : > { %v145_v4 = vsub.f32 %v135_v0, %v140_v2  ;;  %v142_v5 = vsel %vm139_vm0, %v140_v2, %v141_v3  ;;  %s593_s5 = scalar_lea.hbm %s636_s1, %s310_s2  ;;  %s208_s13 = scalar_lea.sflag [#allocation4], %s575_s23 }
  0x39   : > { %v146_v7 = vsub.f32 %v136_v1, %v142_v5  ;;  %s395_s14 = scalar_lea.vmem %s588_s29, 256  ;;  %p645_p11 = scmp.ne.s32.totalorder %s641_s18, 0 }
  0x3a   : > { %149 = vrot.lane.b32.xlu0 %v136_v1, %s464_s25  ;;  %v155_v6 = vmul.f32 %v145_v4, %v145_v4  ;;  %p396_p10 = scmp.ne.s32.totalorder %s588_s29, %s395_s14  ;;  %s466_s10 = smov [#allocation5]  }
  0x3b   : > { %v156_v8 = vmul.f32 %v146_v7, %v146_v7  ;;  %s399_s16 = sshll.u32 %s466_s10, 4  ;;  %s400_s16 = int_to_ptr.vmem [resolvable:$false] %s399_s16 }
  0x3c   : > { %v160_v9 = vrot.slane %v155_v6, 1  ;;  %p397_p12 = pnand %p396_p10, %p645_p11  ;;  %s401_s20 = scalar_lea.vmem %s400_s16, 512 }
  0x3d   : > { %v161_v10 = vrot.slane %v156_v8, 1  ;;  %p402_p5 = scmp.lt.s32.totalorder %s588_s29, %s400_s16  ;;  %p403_p7 = scmp.lt.s32.totalorder %s401_s20, %s395_s14 }
  0x3e   : > { %p398_p4 = pneg %p397_p12 }
  0x3f   : > { %v162_v11 = vsel %vm159_vm1, %v160_v9, %v161_v10  ;;  %v168_v13 = vsel %vm167_vm3, %v161_v10, 0.0  ;;  %p404_p8 = por %p403_p7, %p402_p5 }
  0x40   : > { %v166_v12 = vsel %vm165_vm2, %v162_v11, 0.0 }
  0x41   : > { %v169_v14 = vadd.f32 %v168_v13, %v166_v12  ;;  %p405_p9 = pnand %p404_p8, %p398_p4 }
  0x59   : > { %170 = vadd.xlane.f32.xlu0 %v169_v14 }
  0xa8   : > { %v148_v15 = vpop.permute.xlu0 %147 }
  0xa9   : > { %v153_v16 = vsub.f32 %v135_v0, %v148_v15 }
  0xab   : > { %v179_v17 = vmul.f32 %v153_v16, %v153_v16 }
  0xac   : > { %v150_v18 = vpop.permute.xlu0 %149 }
  0xad   : > { %v154_v19 = vsub.f32 %v136_v1, %v150_v18  ;;  %183 = vrot.lane.b32.xlu1 %v179_v17, %s465_s17 }
  0xaf   : > { %v180_v20 = vmul.f32 %v154_v19, %v154_v19 }
  0xb1   : > { %185 = vrot.lane.b32.xlu1 %v180_v20, %s465_s17 }
  0xe2   : > { %v171_v26 = vpop.xlane.xlu0 %170 }
  0xe3   : > { %v172_v27 = vrot.slane %v171_v26, 4 }
  0xe5   : > { %v173_v28 = vadd.f32 %v172_v27, %v171_v26 }
  0xe7   : > { %v174_v29 = vrot.slane %v173_v28, 2 }
  0xe9   : > { %v175_v30 = vadd.f32 %v174_v29, %v173_v28 }
  0xeb   : > { %v176_v31 = vrot.slane %v175_v30, 1 }
  0xed   : > { %v177_v32 = vadd.f32 %v176_v31, %v175_v30 }
  0xef   : > { %311 = vpush %v177_v32 }
 0x11f   : > { %v184_v21 = vpop.permute.xlu1 %183 }
 0x120   : > { %v190_v23 = vsel %vm189_vm4, %v184_v21, 0.0  ;;  %s312_s27 = spop %311 }
 0x121   : > { %v202_v33 = vstv %s312_s27 }
 0x122   : > { %203 = vst [vmem:[%s134_s28] sm:$0xff] %v202_v33 }
 0x123   : > { %v186_v22 = vpop.permute.xlu1 %185 }
 0x124   : > { %v191_v24 = vsel %vm189_vm4, %v186_v22, 0.0 }
 0x125   : > { %v192_v25 = vadd.f32 %v191_v24, %v190_v23 }
 0x127   : > { %193 = vadd.xlane.f32.xlu1 %v192_v25 }
 0x1b0   : > { %v194_v34 = vpop.xlane.xlu1 %193 }
 0x1b1   : > { %v195_v35 = vrot.slane %v194_v34, 4 }
 0x1b3   : > { %v196_v36 = vadd.f32 %v195_v35, %v194_v34 }
 0x1b5   : > { %v197_v37 = vrot.slane %v196_v36, 2 }
 0x1b7   : > { %v198_v38 = vadd.f32 %v197_v37, %v196_v36 }
 0x1b9   : > { %v199_v39 = vrot.slane %v198_v38, 1 }
 0x1bb   : > { %v200_v40 = vadd.f32 %v199_v39, %v198_v38 }
 0x1bd   : > { %313 = vpush %v200_v40 }
 0x1ee   : > { %s314_s11 = spop %313 }
 0x1ef   : > { %v204_v41 = vstv %s314_s11 }
 0x1f0   : > { %303 = vst [vmem:[%s134_s28 + $0x8] sm:$0xff] %v204_v41 }
 0x1f1   : > { %408 = shalt.err (!%p405_p9)
}
 0x1f2   : > { %s409_s21 = scalar_lea.hbm %s593_s5, 256  ;;  %s413_s26 = scalar_lea.hbm %s636_s1, 2048 }
 0x1f3   : > { %p410_p13 = scmp.ne.s32.totalorder %s593_s5, %s409_s21  ;;  %p414_p2 = scmp.lt.s32.totalorder %s593_s5, %s636_s1 }
 0x1f4   : > { %p415_p3 = scmp.lt.s32.totalorder %s413_s26, %s409_s21 }
 0x1f5   : > { %p411_p1 = pnand %p410_p13, %p645_p11 }
 0x1f6   : > { %p416_p6 = por %p415_p3, %p414_p2 }
 0x1f7   : > { %p412_p0 = pneg %p411_p1 }
 0x1f9   : > { %p417_p10 = pnand %p416_p6, %p412_p0 }
 0x1fb   : > { %420 = shalt.err (!%p417_p10)
}
 0x1fc   : > { %s467_s17 = smov 128   ;;  %s468_s27 = smov 8  }
 0x1fd   : > { %317 = dma.vmem_to_hbm [thread:$0]  (%p645_p11), %s588_s29, 256, %s593_s5, %s208_s13, %s467_s17, %s467_s17, %s468_s27  }
 0x1fe PF: > { %p328_p12 = scmp.ge.s32.totalorder %s459_s9, 2  ;;  %s236_s28 = sand.u32 1, %s447_s6  }
 0x1ff   : > { %p646_p4 = scmp.ne.s32.totalorder %s642_s19, 0  ;;  %s237_s2 = scalar_lea.sflag [#allocation4], %s236_s28 }
 0x201   : > { %p324_p5 = pnand %p328_p12, %p646_p4 }
 0x203   : > { %p325_p7 = pneg %p324_p5 }
 0x205   : > { %442 = dma.done.wait (%p325_p7), %s237_s2, 256  }
 0x206   : > { %444 = vsyncadd (%p325_p7), %s237_s2, 4294967040  ;;  %p14_p8 = scmp.ge.s32.totalorder %s504_s12, 10   ;;  %s647_s6 = smov %s451_s7 }
 0x207   : > { %s648_s7 = smov %s455_s8  ;;  %s649_s8 = smov %s516_s15 }
 0x208   : > { %s650_s9 = smov %s504_s12  ;;  %16 = sbr.rel (!%p14_p8) target bundleno = 5 (0x5), region = 70 }
 0x20d   :  { %242 = vsyncpa [#allocation3], 1 }
 0x20e   :  { %244 = vsyncpa [#allocation3 + $0x1], 1 }
 0x20f   :  { %245 = vsyncpa [#allocation4], 1 }
 0x210   :  { %247 = vsyncpa [#allocation4 + $0x1], 1 }

</bundles_post_ra>
